<compile_context>
chip_gen: v7x
topology: tpu7x:2x2x1
jax: 0.10.0
libtpu: 0.0.40
codegen_flags: <defaults>
</compile_context>

<pallas_src>
import functools

import jax
import jax.numpy as jnp
from jax import lax
from jax.experimental import pallas as pl
from jax.experimental.pallas import tpu as pltpu


def _ceil_to(x: int, m: int) -> int:
    return ((x + m - 1) // m) * m


def _dpp_kernel(x_ref, wf_ref, bf_ref, out_ref, *, n_pad):
    """out = alpha * z_a + (1 - alpha) * z_b, everything from one fused dot."""
    x = x_ref[...]                                        # (tb, F_in), MXU dtype
    # Single MXU push: [z_a | z_b | g_logits] = x @ W_packed^T (+ bias, f32).
    z = jnp.dot(x, wf_ref[...], preferred_element_type=jnp.float32)
    z = z + bf_ref[...]                                   # f32 epilogue
    z_a = z[:, :n_pad]                                    # 128-aligned slices
    z_b = z[:, n_pad:2 * n_pad]
    alpha = jax.nn.sigmoid(z[:, 2 * n_pad:])              # EUP, f32
    # alpha * z_a + (1 - alpha) * z_b  ==  z_b + alpha * (z_a - z_b)
    out_ref[...] = z_b + alpha * (z_a - z_b)


def dpp_layer_shared_g(x, w_a, b_a, w_b, b_b, w_g_shared, b_g_shared,
                       w_g_unit, b_g_unit, *, block_b=512,
                       mxu_dtype=jnp.bfloat16):
    B, F_in = x.shape
    F_out = w_a.shape[0]
    hi = lax.Precision.HIGHEST

    # ---- Fold the gate path once, outside the kernel, at full f32 precision:
    #   g_logits = (x @ Wg_s^T + bg_s) @ Wg_u^T + bg_u
    #            =  x @ (Wg_u @ Wg_s)^T + (Wg_u @ bg_s + bg_u)
    w_gate = jnp.dot(w_g_unit, w_g_shared, precision=hi)          # (F_out, F_in)
    b_gate = jnp.dot(w_g_unit, b_g_shared, precision=hi) + b_g_unit

    # ---- Pack [w_a | w_b | w_gate]; pad each segment to 128 lanes. ----------
    n_pad = _ceil_to(F_out, 128)
    pad = n_pad - F_out

    def _pad(w, b):
        return jnp.pad(w, ((0, pad), (0, 0))), jnp.pad(b, (0, pad))

    w_a_p, b_a_p = _pad(w_a, b_a)
    w_b_p, b_b_p = _pad(w_b, b_b)
    w_g_p, b_g_p = _pad(w_gate, b_gate)

    n_fused = 3 * n_pad
    w_fused_t = jnp.concatenate([w_a_p, w_b_p, w_g_p], axis=0).T  # (F_in, 3*n_pad)
    w_fused_t = w_fused_t.astype(mxu_dtype)
    b_fused = jnp.concatenate([b_a_p, b_b_p, b_g_p]).reshape(1, n_fused)
    b_fused = b_fused.astype(jnp.float32)
    x_mxu = x.astype(mxu_dtype)

    # ---- Batch tiling. -------------------------------------------------------
    tb = min(block_b, B)
    if pl.cdiv(B, tb) < 2 and B >= 512:
        # >=2 grid steps so the "parallel" batch axis shards across both
        # TensorCores on v7x (no effect on single-TC v5e / v6e).
        tb = _ceil_to(pl.cdiv(B, 2), 256)
    grid = (pl.cdiv(B, tb),)

    # ---- Explicit VMEM budget (v5e scoped default 16 MiB; v7x 64 MiB total). -
    wb = jnp.dtype(mxu_dtype).itemsize
    resident = F_in * n_fused * wb + n_fused * 4          # weights+bias (single-buffered)
    per_step = (2 * tb * F_in * wb                        # x, double-buffered
                + 2 * tb * n_pad * 4                      # out, double-buffered
                + tb * n_fused * 4                        # z (f32)
                + 2 * tb * n_pad * 4)                     # alpha / mix temporaries
    vmem_limit = int(min(64 << 20, max(32 << 20, 2 * (resident + per_step))))
    # TODO(synk): add an n_fused / F_in tiling fallback (f32 VMEM accumulator +
    # pl.when init/finalize) for configs where the packed weight alone exceeds
    # roughly half of usable VMEM (hit first on v7x's 64 MiB per TC).

    cost = pl.CostEstimate(
        flops=2 * B * F_in * n_fused,
        transcendentals=B * n_pad,
        bytes_accessed=(B * F_in * wb + F_in * n_fused * wb
                        + n_fused * 4 + B * n_pad * 4),
    )

    kernel = functools.partial(_dpp_kernel, n_pad=n_pad)

    def _build(single_buffer_weights):
        const_kw = ({"pipeline_mode": pl.Buffered(1)}
                    if single_buffer_weights else {})
        return pl.pallas_call(
            kernel,
            out_shape=jax.ShapeDtypeStruct((B, n_pad), jnp.float32),
            grid=grid,
            in_specs=[
                pl.BlockSpec((tb, F_in), lambda i: (i, 0)),                  # x
                pl.BlockSpec((F_in, n_fused), lambda i: (0, 0), **const_kw),  # W packed^T
                pl.BlockSpec((1, n_fused), lambda i: (0, 0), **const_kw),     # bias packed
            ],
            out_specs=pl.BlockSpec((tb, n_pad), lambda i: (i, 0)),
            compiler_params=pltpu.CompilerParams(
                dimension_semantics=("parallel",),
                vmem_limit_bytes=vmem_limit),
            cost_estimate=cost,
        )

    try:
        out_padded = _build(True)(x_mxu, w_fused_t, b_fused)
    except Exception:
        # Fallback for jax builds that reject Buffered(1) on constant operands.
        out_padded = _build(False)(x_mxu, w_fused_t, b_fused)

    return out_padded[:, :F_out]


def reference(x, w_a, b_a, w_b, b_b, w_g_shared, b_g_shared, w_g_unit, b_g_unit):
    hi = lax.Precision.HIGHEST
    z_a = jnp.dot(x, w_a.T, precision=hi) + b_a
    z_b = jnp.dot(x, w_b.T, precision=hi) + b_b
    x_g = jnp.dot(x, w_g_shared.T, precision=hi) + b_g_shared
    g_logits = jnp.dot(x_g, w_g_unit.T, precision=hi) + b_g_unit
    alpha = jax.nn.sigmoid(g_logits)
    return alpha * z_a + (1 - alpha) * z_b


if __name__ == "__main__":
    # Small shapes consistent with the module's forward (x: (batch, input_features)).
    B, F_in, F_out, G = 8, 32, 32, 16

    key = jax.random.PRNGKey(0)
    ks = jax.random.split(key, 9)

    def uni(k, shape, bound):
        return jax.random.uniform(k, shape, jnp.float32, -bound, bound)

    bound_in = 1.0 / (F_in ** 0.5)
    bound_g = 1.0 / (G ** 0.5)

    x = jax.random.normal(ks[0], (B, F_in), jnp.float32)
    w_a = uni(ks[1], (F_out, F_in), bound_in)
    b_a = uni(ks[2], (F_out,), bound_in)
    w_b = uni(ks[3], (F_out, F_in), bound_in)
    b_b = uni(ks[4], (F_out,), bound_in)
    w_g_shared = uni(ks[5], (G, F_in), bound_in)
    b_g_shared = uni(ks[6], (G,), bound_in)
    w_g_unit = uni(ks[7], (F_out, G), bound_g)
    b_g_unit = uni(ks[8], (F_out,), bound_g)

    args = (x, w_a, b_a, w_b, b_b, w_g_shared, b_g_shared, w_g_unit, b_g_unit)
    ref = reference(*args)

    # f32 MXU feed: tight check of the fused/folded/padded kernel logic.
    out_f32 = jax.block_until_ready(
        dpp_layer_shared_g(*args, mxu_dtype=jnp.float32))
    assert out_f32.shape == (B, F_out)
    assert jnp.allclose(out_f32, ref, atol=2e-5, rtol=2e-5), "f32 path mismatch"

    # bf16 MXU feed (default / production path): bf16-appropriate tolerance.
    out_bf16 = jax.block_until_ready(dpp_layer_shared_g(*args))
    assert out_bf16.shape == (B, F_out)
    assert jnp.allclose(out_bf16, ref, atol=5e-2, rtol=5e-2), "bf16 path mismatch"

    print("KERNEL_OK")
</pallas_src>

<mosaic_0001>
module attributes {stable_mosaic.version = 11 : i64} {
  func.func @_dpp_kernel(%arg0: i32, %arg1: memref<8x32xf32, #tpu.memory_space<vmem>>, %arg2: memref<32x384xf32, #tpu.memory_space<vmem>>, %arg3: memref<1x384xf32, #tpu.memory_space<vmem>>, %arg4: memref<8x128xf32, #tpu.memory_space<vmem>>) attributes {dimension_semantics = [#tpu.dimension_semantics<parallel>], iteration_bounds = array<i64: 1>, scalar_prefetch = 0 : i64, scratch_operands = 0 : i64, tpu.core_type = #tpu.core_type<tc>, window_params = [{transform_indices = @transform_0, window_bounds = array<i64: 8, 32>}, {pipeline_mode = #tpu.pipeline_mode<synchronous>, transform_indices = @transform_1, window_bounds = array<i64: 32, 384>}, {pipeline_mode = #tpu.pipeline_mode<synchronous>, transform_indices = @transform_2, window_bounds = array<i64: 1, 384>}, {transform_indices = @transform_3, window_bounds = array<i64: 8, 128>}]} {
    %c0 = arith.constant 0 : index
    %c0_0 = arith.constant 0 : index
    %0 = vector.load %arg1[%c0, %c0_0] : memref<8x32xf32, #tpu.memory_space<vmem>>, vector<8x32xf32>
    %c0_1 = arith.constant 0 : index
    %c0_2 = arith.constant 0 : index
    %1 = vector.load %arg2[%c0_1, %c0_2] : memref<32x384xf32, #tpu.memory_space<vmem>>, vector<32x384xf32>
    %cst = arith.constant dense<0.000000e+00> : vector<8x384xf32>
    %2 = tpu.matmul %0, %1, %cst {dimension_numbers = #tpu.dot_dimension_numbers<[1], [0], [0], [1], [0, 0, 1, 1], [], []>} : vector<8x32xf32>, vector<32x384xf32>, vector<8x384xf32> -> vector<8x384xf32>
    %c0_3 = arith.constant 0 : index
    %c0_4 = arith.constant 0 : index
    %3 = vector.load %arg3[%c0_3, %c0_4] : memref<1x384xf32, #tpu.memory_space<vmem>>, vector<1x384xf32>
    %4 = vector.broadcast %3 : vector<1x384xf32> to vector<8x384xf32>
    %5 = arith.addf %2, %4 : vector<8x384xf32>
    %6 = vector.extract_strided_slice %5 {offsets = [0, 0], sizes = [8, 128], strides = [1, 1]} : vector<8x384xf32> to vector<8x128xf32>
    %7 = vector.extract_strided_slice %5 {offsets = [0, 128], sizes = [8, 128], strides = [1, 1]} : vector<8x384xf32> to vector<8x128xf32>
    %8 = vector.extract_strided_slice %5 {offsets = [0, 256], sizes = [8, 128], strides = [1, 1]} : vector<8x384xf32> to vector<8x128xf32>
    %9 = arith.negf %8 : vector<8x128xf32>
    %10 = math.exp %9 : vector<8x128xf32>
    %cst_5 = arith.constant 1.000000e+00 : f32
    %11 = vector.broadcast %cst_5 : f32 to vector<8x128xf32>
    %12 = arith.addf %11, %10 : vector<8x128xf32>
    %13 = arith.divf %11, %12 : vector<8x128xf32>
    %14 = arith.subf %6, %7 : vector<8x128xf32>
    %15 = arith.mulf %13, %14 : vector<8x128xf32>
    %16 = arith.addf %7, %15 : vector<8x128xf32>
    %c0_6 = arith.constant 0 : index
    %c0_7 = arith.constant 0 : index
    %17 = vector.load %arg4[%c0_6, %c0_7] : memref<8x128xf32, #tpu.memory_space<vmem>>, vector<8x128xf32>
    tpu.vector_store %arg4[%c0_6, %c0_7], %16 {strides = array<i32>} : memref<8x128xf32, #tpu.memory_space<vmem>>, vector<8x128xf32>,
    return
  }
  func.func @transform_0(%arg0: i32) -> (i32, i32) {
    %c0_i32 = arith.constant 0 : i32
    %c0_i32_0 = arith.constant 0 : i32
    return %arg0, %c0_i32 : i32, i32
  }
  func.func @transform_1(%arg0: i32) -> (i32, i32) {
    %c0_i32 = arith.constant 0 : i32
    %c0_i32_0 = arith.constant 0 : i32
    %c0_i32_1 = arith.constant 0 : i32
    return %c0_i32, %c0_i32_0 : i32, i32
  }
  func.func @transform_2(%arg0: i32) -> (i32, i32) {
    %c0_i32 = arith.constant 0 : i32
    %c0_i32_0 = arith.constant 0 : i32
    %c0_i32_1 = arith.constant 0 : i32
    return %c0_i32, %c0_i32_0 : i32, i32
  }
  func.func @transform_3(%arg0: i32) -> (i32, i32) {
    %c0_i32 = arith.constant 0 : i32
    %c0_i32_0 = arith.constant 0 : i32
    return %arg0, %c0_i32 : i32, i32
  }
}

module attributes {stable_mosaic.version = 11 : i64} {
  func.func @_dpp_kernel(%arg0: i32, %arg1: memref<8x32xf32, #tpu.memory_space<vmem>>, %arg2: memref<32x384xf32, #tpu.memory_space<vmem>>, %arg3: memref<1x384xf32, #tpu.memory_space<vmem>>, %arg4: memref<8x128xf32, #tpu.memory_space<vmem>>) attributes {dimension_semantics = [#tpu.dimension_semantics<parallel>], iteration_bounds = array<i64: 1>, scalar_prefetch = 0 : i64, scratch_operands = 0 : i64, tpu.core_type = #tpu.core_type<tc>, window_params = [{transform_indices = @transform_0, window_bounds = array<i64: 8, 32>}, {pipeline_mode = #tpu.pipeline_mode<synchronous>, transform_indices = @transform_1, window_bounds = array<i64: 32, 384>}, {pipeline_mode = #tpu.pipeline_mode<synchronous>, transform_indices = @transform_2, window_bounds = array<i64: 1, 384>}, {transform_indices = @transform_3, window_bounds = array<i64: 8, 128>}]} {
    %c0 = arith.constant 0 : index
    %c0_0 = arith.constant 0 : index
    %0 = vector.load %arg1[%c0, %c0_0] : memref<8x32xf32, #tpu.memory_space<vmem>>, vector<8x32xf32>
    %c0_1 = arith.constant 0 : index
    %c0_2 = arith.constant 0 : index
    %1 = vector.load %arg2[%c0_1, %c0_2] : memref<32x384xf32, #tpu.memory_space<vmem>>, vector<32x384xf32>
    %cst = arith.constant dense<0.000000e+00> : vector<8x384xf32>
    %2 = tpu.matmul %0, %1, %cst {dimension_numbers = #tpu.dot_dimension_numbers<[1], [0], [0], [1], [0, 0, 1, 1], [], []>} : vector<8x32xf32>, vector<32x384xf32>, vector<8x384xf32> -> vector<8x384xf32>
    %c0_3 = arith.constant 0 : index
    %c0_4 = arith.constant 0 : index
    %3 = vector.load %arg3[%c0_3, %c0_4] : memref<1x384xf32, #tpu.memory_space<vmem>>, vector<1x384xf32>
    %4 = vector.broadcast %3 : vector<1x384xf32> to vector<8x384xf32>
    %5 = arith.addf %2, %4 : vector<8x384xf32>
    %6 = vector.extract_strided_slice %5 {offsets = [0, 0], sizes = [8, 128], strides = [1, 1]} : vector<8x384xf32> to vector<8x128xf32>
    %7 = vector.extract_strided_slice %5 {offsets = [0, 128], sizes = [8, 128], strides = [1, 1]} : vector<8x384xf32> to vector<8x128xf32>
    %8 = vector.extract_strided_slice %5 {offsets = [0, 256], sizes = [8, 128], strides = [1, 1]} : vector<8x384xf32> to vector<8x128xf32>
    %9 = arith.negf %8 : vector<8x128xf32>
    %10 = math.exp %9 : vector<8x128xf32>
    %cst_5 = arith.constant 1.000000e+00 : f32
    %11 = vector.broadcast %cst_5 : f32 to vector<8x128xf32>
    %12 = arith.addf %11, %10 : vector<8x128xf32>
    %13 = arith.divf %11, %12 : vector<8x128xf32>
    %14 = arith.subf %6, %7 : vector<8x128xf32>
    %15 = arith.mulf %13, %14 : vector<8x128xf32>
    %16 = arith.addf %7, %15 : vector<8x128xf32>
    %c0_6 = arith.constant 0 : index
    %c0_7 = arith.constant 0 : index
    %17 = vector.load %arg4[%c0_6, %c0_7] : memref<8x128xf32, #tpu.memory_space<vmem>>, vector<8x128xf32>
    tpu.vector_store %arg4[%c0_6, %c0_7], %16 {strides = array<i32>} : memref<8x128xf32, #tpu.memory_space<vmem>>, vector<8x128xf32>,
    return
  }
  func.func @transform_0(%arg0: i32) -> (i32, i32) {
    %c0_i32 = arith.constant 0 : i32
    %c0_i32_0 = arith.constant 0 : i32
    return %arg0, %c0_i32 : i32, i32
  }
  func.func @transform_1(%arg0: i32) -> (i32, i32) {
    %c0_i32 = arith.constant 0 : i32
    %c0_i32_0 = arith.constant 0 : i32
    %c0_i32_1 = arith.constant 0 : i32
    return %c0_i32, %c0_i32_0 : i32, i32
  }
  func.func @transform_2(%arg0: i32) -> (i32, i32) {
    %c0_i32 = arith.constant 0 : i32
    %c0_i32_0 = arith.constant 0 : i32
    %c0_i32_1 = arith.constant 0 : i32
    return %c0_i32, %c0_i32_0 : i32, i32
  }
  func.func @transform_3(%arg0: i32) -> (i32, i32) {
    %c0_i32 = arith.constant 0 : i32
    %c0_i32_0 = arith.constant 0 : i32
    return %arg0, %c0_i32 : i32, i32
  }
}

</mosaic_0001>

<bundles_post_ra>
// kernel: tpu_custom_call.1
= control target key start
LH: loop header
LB: loop body
LE: loop exit
PB: predicated region body
PF: predicated region fallthrough
CT: control target
= control target key end

     0   :  { %8 = vsyncpa [#allocation3], 0  ;;  %s433_s0 = inlined_call_operand.hbm [shape: f32[8,32], index: 0, kind: input, shape index: {}]   ;;  %s434_s1 = inlined_call_operand.hbm [shape: f32[32,384], index: 1, kind: input, shape index: {}]   ;;  %s435_s2 = inlined_call_operand.vmem [shape: f32[1,384], index: 2, kind: input, shape index: {}]   ;;  %s436_s3 = inlined_call_operand.hbm [shape: f32[8,128], index: 3, kind: output, shape index: {}]  }
   0x1   :  { %9 = vsyncpa [#allocation6], 0 }
   0x2   :  { %10 = vsyncpa [#allocation4], 0  ;;  %s359_s12 = smov [#allocation2]   ;;  %s360_s14 = smov [#allocation5]  }
   0x3   :  { %s17_s13 = sshll.u32 %s359_s12, 4  ;;  %s26_s15 = sshll.u32 %s360_s14, 4  ;;  %s18_s13 = int_to_ptr.vmem [resolvable:$true] %s17_s13  ;;  %s387_s15 = int_to_ptr.vmem [resolvable:$true] %s26_s15 }
   0x4   :  { %s287_s18 = scalar_lea.hbm %s433_s0, 128 }
   0x5   :  { %p288_p0 = scmp.ne.s32.totalorder %s433_s0, %s287_s18  ;;  %p291_p1 = scmp.lt.u32.totalorder %s287_s18, %s433_s0 }
   0x7   :  { %p293_p2 = pnand %p291_p1, %p288_p0 }
   0x9   :  { %296 = shalt.err (!%p293_p2)
}
   0xa   :  { %s297_s23 = scalar_lea.vmem %s18_s13, 128  ;;  %p302_p4 = scmp.lt.s32.totalorder %s18_s13, %s18_s13 }
   0xb   :  { %p298_p3 = scmp.ne.s32.totalorder %s18_s13, %s297_s23  ;;  %p303_p5 = scmp.lt.s32.totalorder %s297_s23, %s297_s23 }
   0xd   :  { %p304_p6 = por %p303_p5, %p302_p4 }
   0xf   :  { %p305_p7 = pnand %p304_p6, %p298_p3 }
  0x11   :  { %308 = shalt.err (!%p305_p7)
}
  0x12   :  { %20 = dma.hbm_to_vmem [thread:$0]  %s433_s0, 128, %s18_s13, [#allocation3]  }
  0x13   :  { %s309_s28 = scalar_lea.hbm %s434_s1, 1536 }
  0x14   :  { %p310_p8 = scmp.ne.s32.totalorder %s434_s1, %s309_s28  ;;  %p313_p9 = scmp.lt.u32.totalorder %s309_s28, %s434_s1 }
  0x16   :  { %p315_p10 = pnand %p313_p9, %p310_p8 }
  0x18   :  { %318 = shalt.err (!%p315_p10)
}
  0x19   :  { %s319_s6 = scalar_lea.vmem %s387_s15, 1536  ;;  %p324_p12 = scmp.lt.s32.totalorder %s387_s15, %s387_s15 }
  0x1a   :  { %p320_p11 = scmp.ne.s32.totalorder %s387_s15, %s319_s6  ;;  %p325_p13 = scmp.lt.s32.totalorder %s319_s6, %s319_s6 }
  0x1c   :  { %p326_p0 = por %p325_p13, %p324_p12 }
  0x1e   :  { %p327_p1 = pnand %p326_p0, %p320_p11 }
  0x20   :  { %330 = shalt.err (!%p327_p1)
}
  0x21   :  { %s361_s0 = smov 384   ;;  %s362_s7 = smov 24  }
  0x22   :  { %32 = dma.hbm_to_vmem [thread:$0]  %s434_s1, 1536, %s387_s15, [#allocation6], %s361_s0, %s361_s0, %s362_s7  }
  0x23   :  { %353 = dma.done.wait [#allocation3], 128  }
  0x24   :  { %354 = vsyncadd [#allocation3], 4294967168 }
  0x25   :  { %355 = dma.done.wait [#allocation6], 1536  }
  0x26   :  { %356 = vsyncadd [#allocation6], 4294965760  ;;  %v363_v0 = vmov 0.0|0.0   ;;  %vm364_vm0 = vmmov 0   ;;  %v365_v1 = vmov 0.0   ;;  %v44_v2 = vld [vmem:[#allocation5 + $0x10] sm:$0xff]  ;;  %v56_v21 = vlaneseq }
  0x27   :  { %269 = vmatprep.subr.bf16.mxu1 %v363_v0  ;;  %258 = vmatprep.mubr.msk.f32.mxu1 %vm364_vm0, %v365_v1  ;;  %v47_v3 = vld [vmem:[#allocation5 + $0x28] sm:$0xff]  ;;  %v50_v4 = vld [vmem:[#allocation5 + $0x40] sm:$0xff]  ;;  %v53_v6 = vld [vmem:[#allocation5 + $0x58] sm:$0xff]  ;;  %vm71_vm1 = vcmask 261120  }
  0x28   :  { %139 = vmatprep.mubr.f32.mxu0 %v365_v1  ;;  %v270_v5 = vpack.c.bf16 %v47_v3, %v44_v2  ;;  %v43_v7 = vld [vmem:[#allocation5 + $0x8] sm:$0xff]  ;;  %v46_v8 = vld [vmem:[#allocation5 + $0x20] sm:$0xff]  ;;  %v45_v10 = vld [vmem:[#allocation5 + $0x18] sm:$0xff]  ;;  %v273_v11 = vpack.c.bf16 %v53_v6, %v50_v4  ;;  %v57_v22 = vshrl.u32 %v56_v21, 7 }
  0x29   :  { %v42_v9 = vld [vmem:[#allocation5] sm:$0xff]  ;;  %v261_v12 = vpack.c.bf16 %v46_v8, %v43_v7  ;;  %v49_v14 = vld [vmem:[#allocation5 + $0x38] sm:$0xff]  ;;  %v52_v15 = vld [vmem:[#allocation5 + $0x50] sm:$0xff] }
  0x2a   :  { %271 = vmatpush3.bf16.msra.mxu1 %v270_v5  ;;  %v263_v13 = vpack.c.bf16 %v45_v10, %v42_v9  ;;  %v48_v16 = vld [vmem:[#allocation5 + $0x30] sm:$0xff]  ;;  %v265_v17 = vpack.c.bf16 %v52_v15, %v49_v14  ;;  %v51_v18 = vld [vmem:[#allocation5 + $0x48] sm:$0xff]  ;;  %v41_v20 = vld [vmem:[#allocation2] sm:$0xff]  ;;  %v66_v23 = vsub.s32 2, %v57_v22  ;;  %v58_v25 = vsub.s32 0, %v57_v22 }
  0x2b   :  { %272 = vmatprep.subr.bf16.mxu1 %v363_v0  ;;  %262 = vmatprep.subr.bf16.mxu0 %v261_v12  ;;  %v267_v19 = vpack.c.bf16 %v51_v18, %v48_v16  ;;  %v54_v24 = vld [vmem:[%s435_s2] sm:$0x7]  ;;  %v62_v27 = vsub.s32 1, %v57_v22  ;;  %s366_s2 = smov [#allocation7]  }
  0x2c   :  { %264 = vmatpush1.bf16.msra.mxu0 %v263_v13  ;;  %v67_v26 = vrot.slane %v54_v24, %v66_v23  ;;  %v59_v29 = vrot.slane %v54_v24, %v58_v25  ;;  %s232_s11 = sshll.u32 %s366_s2, 4  ;;  %s233_s11 = int_to_ptr.vmem [resolvable:$true] %s232_s11 }
  0x2d   :  { %266 = vmatprep.subr.bf16.mxu0 %v265_v17  ;;  %v63_v32 = vrot.slane %v54_v24, %v62_v27  ;;  %s331_s12 = scalar_lea.vmem %s233_s11, 128  ;;  %p336_p3 = scmp.lt.s32.totalorder %s233_s11, %s233_s11 }
  0x2e   :  { %274 = vmatpush3.bf16.msra.mxu1 %v273_v11  ;;  %p332_p2 = scmp.ne.s32.totalorder %s233_s11, %s331_s12  ;;  %p337_p4 = scmp.lt.s32.totalorder %s331_s12, %s331_s12 }
  0x30   :  { %268 = vmatpush1.bf16.msra.mxu0 %v267_v19  ;;  %p338_p5 = por %p337_p4, %p336_p3 }
  0x31   :  { %259 = vmatmul.mubr.msk.f32.vlgmr.msra.gmra.mrb[0].mxu1 %vm71_vm1, %v41_v20 }
  0x32   :  { %p339_p6 = pnand %p338_p5, %p332_p2 }
  0x33   :  { %242 = vmatmul.mubr.msk.f32.vlgmr.msra.gmra.mrb[0].mxu0 %vm71_vm1, %v41_v20 }
 0x104   :  { %v212_v28 = vpop.f32.mrb[0].mxu1 }
 0x105   :  { %v213_v30 = vadd.f32 %v212_v28, %v67_v26  ;;  %v260_v31 = vpop.f32.mrb[1].mxu1 }
 0x106   :  { %v141_v34 = vpop.f32.mrb[0].mxu0 }
 0x107   :  { %v244_v33 = vmul.f32 -1.442695, %v213_v30  ;;  %v142_v35 = vadd.f32 %v141_v34, %v59_v29  ;;  %v143_v36 = vpop.f32.mrb[1].mxu0 }
 0x108   :  { %v144_v37 = vadd.f32 %v143_v36, %v63_v32 }
 0x109   :  { %283 = vpow2.f32 %v244_v33 }
 0x10a   :  { %v222_v38 = vsub.f32 %v142_v35, %v144_v37 }
 0x113   :  { %v284_v39 = vpop.eup %283 }
 0x114   :  { %v219_v40 = vadd.f32 1.0, %v284_v39 }
 0x116   :  { %285 = vrcp.f32 %v219_v40 }
 0x120   :  { %v286_v41 = vpop.eup %285 }
 0x121   :  { %v223_v42 = vmul.f32 %v286_v41, %v222_v38 }
 0x123   :  { %v224_v43 = vadd.f32 %v223_v42, %v144_v37 }
 0x125   :  { %225 = vst [vmem:[#allocation7] sm:$0xff] %v224_v43 }
 0x126   :  { %342 = shalt.err (!%p339_p6)
}
 0x127   :  { %s343_s15 = scalar_lea.hbm %s436_s3, 128 }
 0x128   :  { %p344_p7 = scmp.ne.s32.totalorder %s436_s3, %s343_s15  ;;  %p347_p8 = scmp.lt.u32.totalorder %s343_s15, %s436_s3 }
 0x12a   :  { %p349_p9 = pnand %p347_p8, %p344_p7 }
 0x12c   :  { %352 = shalt.err (!%p349_p9)
}
 0x12d   :  { %235 = dma.vmem_to_hbm [thread:$0]  %s233_s11, 128, %s436_s3, [#allocation4]  }
 0x12e   :  { %357 = dma.done.wait [#allocation4], 128  }
 0x12f   :  { %358 = vsyncadd [#allocation4], 4294967168 }
 0x130   :  { %239 = vsyncpa [#allocation3], 1 }
 0x131   :  { %240 = vsyncpa [#allocation6], 1 }
 0x132   :  { %241 = vsyncpa [#allocation4], 1 }

// kernel: tpu_custom_call.1
= control target key start
LH: loop header
LB: loop body
LE: loop exit
PB: predicated region body
PF: predicated region fallthrough
CT: control target
= control target key end

     0   :  { %8 = vsyncpa [#allocation3], 0  ;;  %s433_s0 = inlined_call_operand.hbm [shape: f32[8,32], index: 0, kind: input, shape index: {}]   ;;  %s434_s1 = inlined_call_operand.hbm [shape: f32[32,384], index: 1, kind: input, shape index: {}]   ;;  %s435_s2 = inlined_call_operand.vmem [shape: f32[1,384], index: 2, kind: input, shape index: {}]   ;;  %s436_s3 = inlined_call_operand.hbm [shape: f32[8,128], index: 3, kind: output, shape index: {}]  }
   0x1   :  { %9 = vsyncpa [#allocation6], 0 }
   0x2   :  { %10 = vsyncpa [#allocation4], 0  ;;  %s359_s12 = smov [#allocation2]   ;;  %s360_s14 = smov [#allocation5]  }
   0x3   :  { %s17_s13 = sshll.u32 %s359_s12, 4  ;;  %s26_s15 = sshll.u32 %s360_s14, 4  ;;  %s18_s13 = int_to_ptr.vmem [resolvable:$true] %s17_s13  ;;  %s387_s15 = int_to_ptr.vmem [resolvable:$true] %s26_s15 }
   0x4   :  { %s287_s18 = scalar_lea.hbm %s433_s0, 128 }
   0x5   :  { %p288_p0 = scmp.ne.s32.totalorder %s433_s0, %s287_s18  ;;  %p291_p1 = scmp.lt.u32.totalorder %s287_s18, %s433_s0 }
   0x7   :  { %p293_p2 = pnand %p291_p1, %p288_p0 }
   0x9   :  { %296 = shalt.err (!%p293_p2)
}
   0xa   :  { %s297_s23 = scalar_lea.vmem %s18_s13, 128  ;;  %p302_p4 = scmp.lt.s32.totalorder %s18_s13, %s18_s13 }
   0xb   :  { %p298_p3 = scmp.ne.s32.totalorder %s18_s13, %s297_s23  ;;  %p303_p5 = scmp.lt.s32.totalorder %s297_s23, %s297_s23 }
   0xd   :  { %p304_p6 = por %p303_p5, %p302_p4 }
   0xf   :  { %p305_p7 = pnand %p304_p6, %p298_p3 }
  0x11   :  { %308 = shalt.err (!%p305_p7)
}
  0x12   :  { %20 = dma.hbm_to_vmem [thread:$0]  %s433_s0, 128, %s18_s13, [#allocation3]  }
  0x13   :  { %s309_s28 = scalar_lea.hbm %s434_s1, 1536 }
  0x14   :  { %p310_p8 = scmp.ne.s32.totalorder %s434_s1, %s309_s28  ;;  %p313_p9 = scmp.lt.u32.totalorder %s309_s28, %s434_s1 }
  0x16   :  { %p315_p10 = pnand %p313_p9, %p310_p8 }
  0x18   :  { %318 = shalt.err (!%p315_p10)
}
  0x19   :  { %s319_s6 = scalar_lea.vmem %s387_s15, 1536  ;;  %p324_p12 = scmp.lt.s32.totalorder %s387_s15, %s387_s15 }
  0x1a   :  { %p320_p11 = scmp.ne.s32.totalorder %s387_s15, %s319_s6  ;;  %p325_p13 = scmp.lt.s32.totalorder %s319_s6, %s319_s6 }
  0x1c   :  { %p326_p0 = por %p325_p13, %p324_p12 }
  0x1e   :  { %p327_p1 = pnand %p326_p0, %p320_p11 }
  0x20   :  { %330 = shalt.err (!%p327_p1)
}
  0x21   :  { %s361_s0 = smov 384   ;;  %s362_s7 = smov 24  }
  0x22   :  { %32 = dma.hbm_to_vmem [thread:$0]  %s434_s1, 1536, %s387_s15, [#allocation6], %s361_s0, %s361_s0, %s362_s7  }
  0x23   :  { %353 = dma.done.wait [#allocation3], 128  }
  0x24   :  { %354 = vsyncadd [#allocation3], 4294967168 }
  0x25   :  { %355 = dma.done.wait [#allocation6], 1536  }
  0x26   :  { %356 = vsyncadd [#allocation6], 4294965760  ;;  %v363_v0 = vmov 0.0|0.0   ;;  %vm364_vm0 = vmmov 0   ;;  %v365_v1 = vmov 0.0   ;;  %v44_v2 = vld [vmem:[#allocation5 + $0x10] sm:$0xff]  ;;  %v56_v21 = vlaneseq }
  0x27   :  { %269 = vmatprep.subr.bf16.mxu1 %v363_v0  ;;  %258 = vmatprep.mubr.msk.f32.mxu1 %vm364_vm0, %v365_v1  ;;  %v47_v3 = vld [vmem:[#allocation5 + $0x28] sm:$0xff]  ;;  %v50_v4 = vld [vmem:[#allocation5 + $0x40] sm:$0xff]  ;;  %v53_v6 = vld [vmem:[#allocation5 + $0x58] sm:$0xff]  ;;  %vm71_vm1 = vcmask 261120  }
  0x28   :  { %139 = vmatprep.mubr.f32.mxu0 %v365_v1  ;;  %v270_v5 = vpack.c.bf16 %v47_v3, %v44_v2  ;;  %v43_v7 = vld [vmem:[#allocation5 + $0x8] sm:$0xff]  ;;  %v46_v8 = vld [vmem:[#allocation5 + $0x20] sm:$0xff]  ;;  %v45_v10 = vld [vmem:[#allocation5 + $0x18] sm:$0xff]  ;;  %v273_v11 = vpack.c.bf16 %v53_v6, %v50_v4  ;;  %v57_v22 = vshrl.u32 %v56_v21, 7 }
  0x29   :  { %v42_v9 = vld [vmem:[#allocation5] sm:$0xff]  ;;  %v261_v12 = vpack.c.bf16 %v46_v8, %v43_v7  ;;  %v49_v14 = vld [vmem:[#allocation5 + $0x38] sm:$0xff]  ;;  %v52_v15 = vld [vmem:[#allocation5 + $0x50] sm:$0xff] }
  0x2a   :  { %271 = vmatpush3.bf16.msra.mxu1 %v270_v5  ;;  %v263_v13 = vpack.c.bf16 %v45_v10, %v42_v9  ;;  %v48_v16 = vld [vmem:[#allocation5 + $0x30] sm:$0xff]  ;;  %v265_v17 = vpack.c.bf16 %v52_v15, %v49_v14  ;;  %v51_v18 = vld [vmem:[#allocation5 + $0x48] sm:$0xff]  ;;  %v41_v20 = vld [vmem:[#allocation2] sm:$0xff]  ;;  %v66_v23 = vsub.s32 2, %v57_v22  ;;  %v58_v25 = vsub.s32 0, %v57_v22 }
  0x2b   :  { %272 = vmatprep.subr.bf16.mxu1 %v363_v0  ;;  %262 = vmatprep.subr.bf16.mxu0 %v261_v12  ;;  %v267_v19 = vpack.c.bf16 %v51_v18, %v48_v16  ;;  %v54_v24 = vld [vmem:[%s435_s2] sm:$0x7]  ;;  %v62_v27 = vsub.s32 1, %v57_v22  ;;  %s366_s2 = smov [#allocation7]  }
  0x2c   :  { %264 = vmatpush1.bf16.msra.mxu0 %v263_v13  ;;  %v67_v26 = vrot.slane %v54_v24, %v66_v23  ;;  %v59_v29 = vrot.slane %v54_v24, %v58_v25  ;;  %s232_s11 = sshll.u32 %s366_s2, 4  ;;  %s233_s11 = int_to_ptr.vmem [resolvable:$true] %s232_s11 }
  0x2d   :  { %266 = vmatprep.subr.bf16.mxu0 %v265_v17  ;;  %v63_v32 = vrot.slane %v54_v24, %v62_v27  ;;  %s331_s12 = scalar_lea.vmem %s233_s11, 128  ;;  %p336_p3 = scmp.lt.s32.totalorder %s233_s11, %s233_s11 }
  0x2e   :  { %274 = vmatpush3.bf16.msra.mxu1 %v273_v11  ;;  %p332_p2 = scmp.ne.s32.totalorder %s233_s11, %s331_s12  ;;  %p337_p4 = scmp.lt.s32.totalorder %s331_s12, %s331_s12 }
  0x30   :  { %268 = vmatpush1.bf16.msra.mxu0 %v267_v19  ;;  %p338_p5 = por %p337_p4, %p336_p3 }
  0x31   :  { %259 = vmatmul.mubr.msk.f32.vlgmr.msra.gmra.mrb[0].mxu1 %vm71_vm1, %v41_v20 }
  0x32   :  { %p339_p6 = pnand %p338_p5, %p332_p2 }
  0x33   :  { %242 = vmatmul.mubr.msk.f32.vlgmr.msra.gmra.mrb[0].mxu0 %vm71_vm1, %v41_v20 }
 0x104   :  { %v212_v28 = vpop.f32.mrb[0].mxu1 }
 0x105   :  { %v213_v30 = vadd.f32 %v212_v28, %v67_v26  ;;  %v260_v31 = vpop.f32.mrb[1].mxu1 }
 0x106   :  { %v141_v34 = vpop.f32.mrb[0].mxu0 }
 0x107   :  { %v244_v33 = vmul.f32 -1.442695, %v213_v30  ;;  %v142_v35 = vadd.f32 %v141_v34, %v59_v29  ;;  %v143_v36 = vpop.f32.mrb[1].mxu0 }
 0x108   :  { %v144_v37 = vadd.f32 %v143_v36, %v63_v32 }
 0x109   :  { %283 = vpow2.f32 %v244_v33 }
 0x10a   :  { %v222_v38 = vsub.f32 %v142_v35, %v144_v37 }
 0x113   :  { %v284_v39 = vpop.eup %283 }
 0x114   :  { %v219_v40 = vadd.f32 1.0, %v284_v39 }
 0x116   :  { %285 = vrcp.f32 %v219_v40 }
 0x120   :  { %v286_v41 = vpop.eup %285 }
 0x121   :  { %v223_v42 = vmul.f32 %v286_v41, %v222_v38 }
 0x123   :  { %v224_v43 = vadd.f32 %v223_v42, %v144_v37 }
 0x125   :  { %225 = vst [vmem:[#allocation7] sm:$0xff] %v224_v43 }
 0x126   :  { %342 = shalt.err (!%p339_p6)
}
 0x127   :  { %s343_s15 = scalar_lea.hbm %s436_s3, 128 }
 0x128   :  { %p344_p7 = scmp.ne.s32.totalorder %s436_s3, %s343_s15  ;;  %p347_p8 = scmp.lt.u32.totalorder %s343_s15, %s436_s3 }
 0x12a   :  { %p349_p9 = pnand %p347_p8, %p344_p7 }
 0x12c   :  { %352 = shalt.err (!%p349_p9)
}
 0x12d   :  { %235 = dma.vmem_to_hbm [thread:$0]  %s233_s11, 128, %s436_s3, [#allocation4]  }
 0x12e   :  { %357 = dma.done.wait [#allocation4], 128  }
 0x12f   :  { %358 = vsyncadd [#allocation4], 4294967168 }
 0x130   :  { %239 = vsyncpa [#allocation3], 1 }
 0x131   :  { %240 = vsyncpa [#allocation6], 1 }
 0x132   :  { %241 = vsyncpa [#allocation4], 1 }

</bundles_post_ra>
